<compile_context>
chip_gen: v5e
topology: v5e:2x2
jax: 0.10.0
libtpu: 0.0.40
codegen_flags: <defaults>
</compile_context>

<pallas_src>
import math

import numpy as np
import jax
import jax.numpy as jnp
from jax.experimental import pallas as pl
from jax.experimental.pallas import tpu as pltpu


# --------------------------------------------------------------------------- glue:
# deterministic construction of the circuit matrices (parameter setup, not hot path)

def _kron_all(mats):
    out = mats[0]
    for m in mats[1:]:
        out = np.kron(out, m)
    return out


def _rx(t):
    c, s = math.cos(t / 2.0), math.sin(t / 2.0)
    return np.array([[c, -1j * s], [-1j * s, c]], dtype=np.complex128)


def _ry(t):
    c, s = math.cos(t / 2.0), math.sin(t / 2.0)
    return np.array([[c, -s], [s, c]], dtype=np.complex128)


def _rz(t):
    return np.array([[np.exp(-1j * t / 2.0), 0.0],
                     [0.0, np.exp(1j * t / 2.0)]], dtype=np.complex128)


def _cnot_full(n, c, t):
    I = np.eye(2)
    X = np.array([[0.0, 1.0], [1.0, 0.0]])
    P0 = np.diag([1.0, 0.0])
    P1 = np.diag([0.0, 1.0])
    ops0 = [P0 if i == c else I for i in range(n)]
    ops1 = [P1 if i == c else (X if i == t else I) for i in range(n)]
    return (_kron_all(ops0) + _kron_all(ops1)).astype(np.complex128)


def _build_raw(num_qubit, num_layer, theta):
    """Raw circuit pieces (numpy): H_all, per-layer ansatz unitaries, Z tables."""
    n = num_qubit
    dim = 2 ** n
    H1 = np.array([[1.0, 1.0], [1.0, -1.0]]) / np.sqrt(2.0)
    H_all = _kron_all([H1] * n)                      # real & symmetric

    theta_np = np.asarray(theta, dtype=np.float64)
    Us = []
    for l in range(num_layer):
        th = theta_np[l * 3 * n:(l + 1) * 3 * n]
        gates = []
        for i in range(n):
            # circuit order RX -> RY -> RZ  =>  matrix product RZ @ RY @ RX
            gates.append(_rz(th[3 * i + 2]) @ _ry(th[3 * i + 1]) @ _rx(th[3 * i]))
        U = _kron_all(gates)
        for i in range(n - 1):                        # CNOT(0,1), CNOT(1,2), ...
            U = _cnot_full(n, i, i + 1) @ U
        Us.append(U)
    Us = np.stack(Us)                                 # (L, dim, dim) complex

    # z_i(s) = +1 if the wire-i bit of basis index s is 0 else -1 (wire 0 = MSB)
    s = np.arange(dim)
    z = np.stack([1 - 2 * ((s >> (n - 1 - i)) & 1) for i in range(n)]).astype(np.float64)
    Zmat = np.concatenate([z, z[:-1] * z[1:]], axis=0)  # (2n-1, dim): RZ rows + ZZ rows
    z0 = z[0:1]                                         # (1, dim): PauliZ(0) eigenvalues
    return H_all, Us, Zmat, z0


def build_kernel_operands(num_qubit, num_layer, theta):
    """Fold H into the per-layer unitaries and emit one fused real (4d,4d) matrix
    per layer for the extended [re|im|im|re] state layout, plus the phase table
    and the <Z_0> measurement weights."""
    dim = 2 ** num_qubit
    H_all, Us, Zmat, z0 = _build_raw(num_qubit, num_layer, theta)

    G = []
    for l in range(num_layer):
        # M_l = H @ U_l for all but the last layer (the next layer's Hadamards),
        # M_{L-1} = U_{L-1}.  Row-vector convention: state_row @ M_l^T.
        M = Us[l] if l == num_layer - 1 else (H_all @ Us[l])
        MT = M.T
        ure, uim = MT.real, MT.imag
        # [tre | tim] @ A = [re' | im'] ;  [tre | tim] @ A_sw = [im' | re']
        A = np.block([[ure, uim], [-uim, ure]])                   # (2d, 2d)
        A_sw = np.concatenate([A[:, dim:], A[:, :dim]], axis=1)   # (2d, 2d)
        row = np.concatenate([A, A_sw], axis=1)                   # (2d, 4d)
        G.append(np.concatenate([row, row], axis=0))              # (4d, 4d)
    G = np.stack(G)                                               # (L, 4d, 4d)

    # s_ext = [re|im|im|re]  ->  sum(s_ext^2 * w_ext) = sum((re^2+im^2) * z0)
    w_ext = 0.5 * np.concatenate([z0, z0, z0, z0], axis=1)        # (1, 4d)

    return (jnp.asarray(G, jnp.float32),
            jnp.asarray(Zmat, jnp.float32),
            jnp.asarray(w_ext, jnp.float32))


def get_angles(x):
    """Mirror of qml_model.get_angles with nqe_model=None."""
    last = x[:, -1, :]                                       # (batch, n)
    phi = (jnp.pi - last[:, :-1]) * (jnp.pi - last[:, 1:])   # (batch, n-1)
    return jnp.concatenate([last, phi], axis=1)              # (batch, 2n-1)


# --------------------------------------------------------------------------- kernel

def qml_kernel(c_ref, g_ref, w_ref, out_ref):
    """Single-invocation kernel: unrolled layer chain on the extended real state.

    c_ref   : (batch, 4*dim)  per-batch diagonal coefficients [dre|dre|-dsi|dsi]
    g_ref   : (L, 4*dim, 4*dim) fused per-layer (H-folded) real unitary blocks
    w_ref   : (1, 4*dim)      measurement weights (0.5 * [z0|z0|z0|z0])
    out_ref : (batch, 4*dim)  weighted squared amplitudes (summed in the wrapper)
    """
    c = c_ref[...]
    batch, d4 = c.shape
    d = d4 // 4
    num_layer = g_ref.shape[0]

    # Initial state H|0..0> = uniform real amplitude 1/sqrt(dim), in extended
    # layout [re | im | im | re]  ->  [u..u | 0..0 | 0..0 | u..u].
    lane = jax.lax.broadcasted_iota(jnp.int32, (batch, d4), 1)
    amp = jnp.float32(1.0 / math.sqrt(d))
    s = jnp.where(jnp.logical_or(lane < d, lane >= 3 * d), amp, jnp.float32(0.0))

    # num_layer is a static compile-time constant: the Python loop is fully
    # unrolled in the trace (equivalent to fori_loop(unroll=True)), so the LLO
    # scheduler sees the entire layer chain with no per-grid-step overhead.
    for l in range(num_layer):
        # one elementwise complex-diagonal multiply + ONE fused MXU matmul/layer
        s = jnp.dot(c * s, g_ref[l], preferred_element_type=jnp.float32)

    # lane-dense output: per-basis-state probability * Z_0 eigenvalue
    out_ref[...] = s * s * w_ref[...]


def qml_forward(x, theta, num_qubit, num_layer):
    n = num_qubit
    dim = 2 ** n
    batch = x.shape[0]
    assert x.shape[-1] == n, "feature_size must equal num_qubit for the ZZ feature map"
    assert num_layer >= 1

    G, Zmat, w_ext = build_kernel_operands(n, num_layer, theta)

    angles = get_angles(x.astype(jnp.float32))   # (batch, 2n-1)
    # diagonal of  prod_i exp(-i a_i Z_i) * prod_i exp(-i a_{n+i} Z_i Z_{i+1})
    phase = -(angles @ Zmat)                     # (batch, dim)
    dre = jnp.cos(phase)
    dsi = jnp.sin(phase)
    # coefficients so that  c * [re|im|im|re]  contracted with G_l gives the
    # complex-diagonal product followed by the fused (H-folded) unitary
    c = jnp.concatenate([dre, dre, -dsi, dsi], axis=-1)   # (batch, 4*dim)

    weighted = pl.pallas_call(
        qml_kernel,
        out_shape=jax.ShapeDtypeStruct((batch, 4 * dim), jnp.float32),
        in_specs=[
            pl.BlockSpec(memory_space=pltpu.MemorySpace.VMEM),   # c
            pl.BlockSpec(memory_space=pltpu.MemorySpace.VMEM),   # G (all layers)
            pl.BlockSpec(memory_space=pltpu.MemorySpace.VMEM),   # w_ext
        ],
        out_specs=pl.BlockSpec(memory_space=pltpu.MemorySpace.VMEM),
    )(c, G, w_ext)

    # final lane reduction (kept in the wrapper to avoid a 1-lane masked store)
    return jnp.sum(weighted, axis=-1, keepdims=True)      # (batch, 1) float32


# ------------------------------------------------------------------ pure-JAX reference
# Simulates the *unfolded* circuit (explicit H each layer) to validate the folding.

def reference_forward(x, theta, num_qubit, num_layer):
    n = num_qubit
    dim = 2 ** n
    H_all, Us, Zmat, z0 = _build_raw(n, num_layer, theta)
    angles = get_angles(x.astype(jnp.float32))
    phase = -(angles @ jnp.asarray(Zmat, jnp.float32))
    diag = (jnp.cos(phase) + 1j * jnp.sin(phase)).astype(jnp.complex64)
    H = jnp.asarray(H_all, jnp.complex64)
    UsT = jnp.asarray(np.transpose(Us, (0, 2, 1)), jnp.complex64)
    state = jnp.zeros((x.shape[0], dim), jnp.complex64).at[:, 0].set(1.0)
    for l in range(num_layer):
        state = (state @ H) * diag
        state = state @ UsT[l]
    prob = jnp.abs(state) ** 2
    return jnp.sum(prob * jnp.asarray(z0, jnp.float32),
                   axis=-1, keepdims=True).astype(jnp.float32)


# ------------------------------------------------------------------------------- main

if __name__ == "__main__":
    num_qubit = 4          # -> 2^4 = 16-dim statevector, feature_size = 4
    num_layer = 3
    batch, seq_len = 8, 8

    key = jax.random.PRNGKey(0)
    kx, kt = jax.random.split(key)
    x = jax.random.uniform(kx, (batch, seq_len, num_qubit), jnp.float32)
    # theta ~ U[0, 2*pi), matches torch.rand(required_parameters) * 2*pi
    theta = jax.random.uniform(kt, (3 * num_qubit * num_layer,), jnp.float32,
                               minval=0.0, maxval=2.0 * jnp.pi)

    out = qml_forward(x, theta, num_qubit, num_layer)
    out = jax.block_until_ready(out)

    ref = reference_forward(x, theta, num_qubit, num_layer)
    assert out.shape == (batch, 1) and out.dtype == jnp.float32
    np.testing.assert_allclose(np.asarray(out), np.asarray(ref), atol=1e-4, rtol=1e-4)
    print("KERNEL_OK")

    # TODO(synk): the nqe_model (RNN-based angle encoder) branch of get_angles and
    # the chk=True circuit-drawing path are not implemented (nqe_model=None default).
</pallas_src>

<mosaic_0001>
module attributes {stable_mosaic.version = 11 : i64} {
  func.func @qml_kernel(%arg0: memref<8x64xf32, #tpu.memory_space<vmem>>, %arg1: memref<3x64x64xf32, #tpu.memory_space<vmem>>, %arg2: memref<1x64xf32, #tpu.memory_space<vmem>>, %arg3: memref<8x64xf32, #tpu.memory_space<vmem>>) attributes {dimension_semantics = [], scalar_prefetch = 0 : i64, scratch_operands = 0 : i64, tpu.core_type = #tpu.core_type<tc>} {
    %c0 = arith.constant 0 : index
    %c0_0 = arith.constant 0 : index
    %0 = vector.load %arg0[%c0, %c0_0] : memref<8x64xf32, #tpu.memory_space<vmem>>, vector<8x64xf32>
    %1 = tpu.iota {dimensions = array<i32: 1>} : vector<8x64xi32>
    %c16_i32 = arith.constant 16 : i32
    %2 = vector.broadcast %c16_i32 : i32 to vector<8x64xi32>
    %3 = arith.cmpi slt, %1, %2 : vector<8x64xi32>
    %c48_i32 = arith.constant 48 : i32
    %4 = vector.broadcast %c48_i32 : i32 to vector<8x64xi32>
    %5 = arith.cmpi sge, %1, %4 : vector<8x64xi32>
    %6 = arith.ori %3, %5 : vector<8x64xi1>
    %cst = arith.constant 2.500000e-01 : f32
    %cst_1 = arith.constant 0.000000e+00 : f32
    %7 = vector.broadcast %cst : f32 to vector<8x64xf32>
    %8 = vector.broadcast %cst_1 : f32 to vector<8x64xf32>
    %9 = arith.select %6, %7, %8 : vector<8x64xi1>, vector<8x64xf32>
    %10 = arith.mulf %0, %9 : vector<8x64xf32>
    %c0_2 = arith.constant 0 : index
    %c0_3 = arith.constant 0 : index
    %c0_4 = arith.constant 0 : index
    %11 = vector.load %arg1[%c0_2, %c0_3, %c0_4] : memref<3x64x64xf32, #tpu.memory_space<vmem>>, vector<1x64x64xf32>
    %12 = vector.shape_cast %11 : vector<1x64x64xf32> to vector<64x64xf32>
    %cst_5 = arith.constant dense<0.000000e+00> : vector<8x64xf32>
    %13 = tpu.matmul %10, %12, %cst_5 {dimension_numbers = #tpu.dot_dimension_numbers<[1], [0], [0], [1], [0, 0, 1, 1], [], []>} : vector<8x64xf32>, vector<64x64xf32>, vector<8x64xf32> -> vector<8x64xf32>
    %14 = arith.mulf %0, %13 : vector<8x64xf32>
    %c1 = arith.constant 1 : index
    %c0_6 = arith.constant 0 : index
    %c0_7 = arith.constant 0 : index
    %15 = vector.load %arg1[%c1, %c0_6, %c0_7] : memref<3x64x64xf32, #tpu.memory_space<vmem>>, vector<1x64x64xf32>
    %16 = vector.shape_cast %15 : vector<1x64x64xf32> to vector<64x64xf32>
    %cst_8 = arith.constant dense<0.000000e+00> : vector<8x64xf32>
    %17 = tpu.matmul %14, %16, %cst_8 {dimension_numbers = #tpu.dot_dimension_numbers<[1], [0], [0], [1], [0, 0, 1, 1], [], []>} : vector<8x64xf32>, vector<64x64xf32>, vector<8x64xf32> -> vector<8x64xf32>
    %18 = arith.mulf %0, %17 : vector<8x64xf32>
    %c2 = arith.constant 2 : index
    %c0_9 = arith.constant 0 : index
    %c0_10 = arith.constant 0 : index
    %19 = vector.load %arg1[%c2, %c0_9, %c0_10] : memref<3x64x64xf32, #tpu.memory_space<vmem>>, vector<1x64x64xf32>
    %20 = vector.shape_cast %19 : vector<1x64x64xf32> to vector<64x64xf32>
    %cst_11 = arith.constant dense<0.000000e+00> : vector<8x64xf32>
    %21 = tpu.matmul %18, %20, %cst_11 {dimension_numbers = #tpu.dot_dimension_numbers<[1], [0], [0], [1], [0, 0, 1, 1], [], []>} : vector<8x64xf32>, vector<64x64xf32>, vector<8x64xf32> -> vector<8x64xf32>
    %22 = arith.mulf %21, %21 : vector<8x64xf32>
    %c0_12 = arith.constant 0 : index
    %c0_13 = arith.constant 0 : index
    %23 = vector.load %arg2[%c0_12, %c0_13] : memref<1x64xf32, #tpu.memory_space<vmem>>, vector<1x64xf32>
    %24 = vector.broadcast %23 : vector<1x64xf32> to vector<8x64xf32>
    %25 = arith.mulf %22, %24 : vector<8x64xf32>
    %c0_14 = arith.constant 0 : index
    %c0_15 = arith.constant 0 : index
    %26 = vector.load %arg3[%c0_14, %c0_15] : memref<8x64xf32, #tpu.memory_space<vmem>>, vector<8x64xf32>
    tpu.vector_store %arg3[%c0_14, %c0_15], %25 {strides = array<i32>} : memref<8x64xf32, #tpu.memory_space<vmem>>, vector<8x64xf32>,
    return
  }
}

</mosaic_0001>

<bundles_post_ra>
// kernel: tpu_custom_call.1
= control target key start
LH: loop header
LB: loop body
LE: loop exit
PB: predicated region body
PF: predicated region fallthrough
CT: control target
= control target key end

     0   :  { %8 = vsyncpa [#allocation3], 0  ;;  %s306_s0 = inlined_call_operand.hbm [shape: f32[8,64], index: 0, kind: input, shape index: {}]   ;;  %s307_s1 = inlined_call_operand.hbm [shape: f32[3,64,64], index: 1, kind: input, shape index: {}]   ;;  %s308_s2 = inlined_call_operand.vmem [shape: f32[1,64], index: 2, kind: input, shape index: {}]   ;;  %s309_s3 = inlined_call_operand.hbm [shape: f32[8,64], index: 3, kind: output, shape index: {}]  }
   0x1   :  { %9 = vsyncpa [#allocation6], 0 }
   0x2   :  { %10 = vsyncpa [#allocation4], 0  ;;  %s16_s14 = sshll.u32 %s306_s0, 4  ;;  %s264_s15 = smov [#allocation2]   ;;  %s17_s14 = int_to_ptr.hbm [resolvable:$true] %s16_s14 }
   0x3   :  { %s18_s16 = sshll.u32 %s264_s15, 4  ;;  %s26_s19 = sshll.u32 %s307_s1, 4  ;;  %s19_s16 = int_to_ptr.vmem [resolvable:$true] %s18_s16  ;;  %s27_s19 = int_to_ptr.hbm [resolvable:$true] %s26_s19 }
   0x4   :  { %21 = dma.hbm_to_vmem [thread:$0]  %s17_s14, 128, %s19_s16, [#allocation3]  }
   0x5   :  { %s265_s20 = smov [#allocation5]   ;;  %s266_s22 = smov 128  }
   0x6   :  { %s28_s21 = sshll.u32 %s265_s20, 4  ;;  %s267_s23 = smov 8   ;;  %s29_s21 = int_to_ptr.vmem [resolvable:$true] %s28_s21 }
   0x7   :  { %34 = dma.hbm_to_vmem [thread:$0]  %s27_s19, 3072, %s29_s21, [#allocation6], %s266_s22, %s266_s22, %s267_s23  }
   0x8   :  { %258 = dma.done.wait [#allocation3], 128  }
   0x9   :  { %259 = vsyncadd [#allocation3], 4294967168 }
   0xa   :  { %260 = dma.done.wait [#allocation6], 3072  }
   0xb   :  { %261 = vsyncadd [#allocation6], 4294964224  ;;  %v46_v0 = vlaneseq  ;;  %v60_v2 = vld [vmem:[#allocation5 + $0x38] sm:$0xff]  ;;  %v59_v3 = vld [vmem:[#allocation5 + $0x30] sm:$0xff]  ;;  %v268_v13 = vmov 0.0   ;;  %vm61_vm3 = vcmask 523264  }
   0xc   :  { %73 = vmatpush.msra.mxu0 %v60_v2  ;;  %v58_v4 = vld [vmem:[#allocation5 + $0x28] sm:$0xff]  ;;  %v94_v5 = vld [vmem:[#allocation5 + $0x78] sm:$0xff]  ;;  %v93_v6 = vld [vmem:[#allocation5 + $0x70] sm:$0xff]  ;;  %s269_s24 = smov [#allocation7]   ;;  %s165_s28 = sshll.u32 %s309_s3, 4  ;;  %s166_s28 = int_to_ptr.hbm [resolvable:$true] %s165_s28 }
   0xd   :  { %v47_v1 = vand.u32 127, %v46_v0  ;;  %v57_v7 = vld [vmem:[#allocation5 + $0x20] sm:$0xff]  ;;  %106 = vmatpush.msra.mxu1 %v94_v5  ;;  %v92_v8 = vld [vmem:[#allocation5 + $0x68] sm:$0xff]  ;;  %v56_v9 = vld [vmem:[#allocation5 + $0x18] sm:$0xff]  ;;  %s163_s25 = sshll.u32 %s269_s24, 4  ;;  %s164_s25 = int_to_ptr.vmem [resolvable:$true] %s163_s25 }
   0xe   :  { %74 = vmatpush.msra.mxu0 %v59_v3  ;;  %v91_v10 = vld [vmem:[#allocation5 + $0x60] sm:$0xff]  ;;  %v55_v11 = vld [vmem:[#allocation5 + $0x10] sm:$0xff]  ;;  %v45_v12 = vld [vmem:[#allocation2] sm:$0xff] }
   0xf   :  { %vm48_vm0 = vcmp.lt.s32.totalorder %v47_v1, 16  ;;  %vm49_vm1 = vcmp.ge.s32.totalorder %v47_v1, 48  ;;  %107 = vmatpush.msra.mxu1 %v93_v6  ;;  %v90_v15 = vld [vmem:[#allocation5 + $0x58] sm:$0xff]  ;;  %v54_v16 = vld [vmem:[#allocation5 + $0x8] sm:$0xff]  ;;  %v89_v17 = vld [vmem:[#allocation5 + $0x50] sm:$0xff] }
  0x10   :  { %75 = vmatpush.msra.mxu0 %v58_v4  ;;  %vm50_vm2 = vmor %vm48_vm0, %vm49_vm1  ;;  %v53_v18 = vld [vmem:[#allocation5] sm:$0xff]  ;;  %v88_v20 = vld [vmem:[#allocation5 + $0x48] sm:$0xff] }
  0x11   :  { %108 = vmatpush.msra.mxu1 %v92_v8  ;;  %v51_v14 = vsel %vm50_vm2, 0.25, %v268_v13  ;;  %v87_v21 = vld [vmem:[#allocation5 + $0x40] sm:$0xff]  ;;  %v127_v22 = vld [vmem:[#allocation5 + $0xb8] sm:$0xff]  ;;  %v126_v23 = vld [vmem:[#allocation5 + $0xb0] sm:$0xff] }
  0x12   :  { %76 = vmatpush.msra.mxu0 %v57_v7  ;;  %v52_v19 = vmul.f32 %v51_v14, %v45_v12  ;;  %139 = vmatpush.msra.mxu2 %v127_v22  ;;  %v125_v24 = vld [vmem:[#allocation5 + $0xa8] sm:$0xff]  ;;  %v124_v25 = vld [vmem:[#allocation5 + $0xa0] sm:$0xff]  ;;  %v123_v26 = vld [vmem:[#allocation5 + $0x98] sm:$0xff] }
  0x13   :  { %109 = vmatpush.msra.mxu1 %v91_v10  ;;  %v122_v27 = vld [vmem:[#allocation5 + $0x90] sm:$0xff]  ;;  %v121_v30 = vld [vmem:[#allocation5 + $0x88] sm:$0xff]  ;;  %v120_v31 = vld [vmem:[#allocation5 + $0x80] sm:$0xff] }
  0x14   :  { %77 = vmatpush.msra.mxu0 %v56_v9  ;;  %140 = vmatpush.msra.mxu2 %v126_v23  ;;  %v185_v34 = vld [vmem:[%s308_s2] ss:$0 sm:$0xff] }
  0x15   :  { %110 = vmatpush.msra.mxu1 %v90_v15 }
  0x16   :  { %78 = vmatpush.msra.mxu0 %v55_v11  ;;  %141 = vmatpush.msra.mxu2 %v125_v24 }
  0x17   :  { %111 = vmatpush.msra.mxu1 %v89_v17 }
  0x18   :  { %79 = vmatpush.msra.mxu0 %v54_v16  ;;  %142 = vmatpush.msra.mxu2 %v124_v25 }
  0x19   :  { %112 = vmatpush.msra.mxu1 %v88_v20 }
  0x1a   :  { %80 = vmatpush.msra.mxu0 %v53_v18  ;;  %143 = vmatpush.msra.mxu2 %v123_v26 }
  0x1b   :  { %176 = vmatmul.msk.f32.vlgmr.msra.gmra.mxu0 %vm61_vm3, %v52_v19  ;;  %113 = vmatpush.msra.mxu1 %v87_v21 }
  0x1c   :  { %144 = vmatpush.msra.mxu2 %v122_v27 }
  0x1e   :  { %145 = vmatpush.msra.mxu2 %v121_v30 }
  0x20   :  { %146 = vmatpush.msra.mxu2 %v120_v31 }
  0x98   :  { %v82_v28 = vpop.f32.mrf.mxu0 }
  0x99   :  { %v85_v29 = vmul.f32 %v82_v28, %v45_v12 }
  0x9b   :  { %177 = vmatmul.msk.f32.vlgmr.msra.gmra.mxu1 %vm61_vm3, %v85_v29 }
 0x118   :  { %v115_v32 = vpop.f32.mrf.mxu1 }
 0x119   :  { %v118_v33 = vmul.f32 %v115_v32, %v45_v12 }
 0x11b   :  { %178 = vmatmul.msk.f32.vlgmr.msra.gmra.mxu2 %vm61_vm3, %v118_v33 }
 0x19e   :  { %v148_v35 = vpop.f32.mrf.mxu2 }
 0x19f   :  { %v151_v36 = vmul.f32 %v148_v35, %v148_v35 }
 0x1a1   :  { %v156_v37 = vmul.f32 %v185_v34, %v151_v36 }
 0x1a3   :  { %157 = vst.msk [vmem:[#allocation7] sm:$0xff] %vm61_vm3, %v156_v37 }
 0x1a4   :  { %168 = dma.vmem_to_hbm [thread:$0]  %s164_s25, 128, %s166_s28, [#allocation4]  }
 0x1a5   :  { %262 = dma.done.wait [#allocation4], 128  }
 0x1a6   :  { %263 = vsyncadd [#allocation4], 4294967168 }
 0x1a7   :  { %173 = vsyncpa [#allocation3], 1 }
 0x1a8   :  { %174 = vsyncpa [#allocation6], 1 }
 0x1a9   :  { %175 = vsyncpa [#allocation4], 1 }

</bundles_post_ra>
